<compile_context>
chip_gen: v6e
topology: v6e:2x2x1
jax: 0.10.0
libtpu: 0.0.40
codegen_flags: <defaults>
</compile_context>

<pallas_src>
import functools

import jax
import jax.numpy as jnp
from jax import lax
from jax.experimental import pallas as pl
from jax.experimental.pallas import tpu as pltpu


def _round_up(x: int, m: int) -> int:
    return ((x + m - 1) // m) * m


def _vmem_limit_bytes() -> int:
    """Generation-aware scoped-VMEM cap (75% of physical, <= 110 MiB)."""
    try:
        cap = int(pltpu.get_tpu_info().vmem_capacity_bytes)
    except Exception:
        cap = 64 * 1024 * 1024  # conservative fallback (v7x per-TC physical)
    return min(int(cap * 0.75), 110 * 1024 * 1024)


def fc_kernel(x_ref, w_ref, b_ref, o_ref, acc_ref, *, use_activation, mxu_dtype):
    k = pl.program_id(2)

    @pl.when(k == 0)
    def _init():
        # Seed the accumulator with the bias: drops the epilogue VPU add and
        # the zeros materialization.
        acc_ref[...] = jnp.broadcast_to(
            b_ref[...].astype(jnp.float32), acc_ref.shape
        )

    x = x_ref[...]
    if use_activation:
        # tanh on the EUP slot; effectively free while MXU/DMA dominates.
        x = jnp.tanh(x)

    w = w_ref[...]
    if mxu_dtype is not None:
        # Opt-in low-precision MXU path (bf16 on v6e/v7x); f32 accumulation
        # is preserved via preferred_element_type below.
        x = x.astype(mxu_dtype)
        w = w.astype(mxu_dtype)

    # Weight tile stays in native [out_dim, in_dim] layout: contract x dim 1
    # with w dim 1 -> (tm, tn).  NT orientation (both operands lane-contracted)
    # is the same shape the flash-attention q@k.T kernels use on the MXU.
    acc_ref[...] += lax.dot_general(
        x,
        w,
        dimension_numbers=(((1,), (1,)), ((), ())),
        preferred_element_type=jnp.float32,
    )

    @pl.when(k == pl.num_programs(2) - 1)
    def _epilogue():
        o_ref[...] = acc_ref[...].astype(o_ref.dtype)


def fc_layer(
    x,
    weight,
    bias,
    *,
    use_activation=True,
    tm=512,
    tn=512,
    tk=1024,
    mxu_dtype=None,
):
    """x: [B, in_dim]; weight: [out_dim, in_dim] (PyTorch layout); bias: [out_dim]."""
    B, in_dim = x.shape
    out_dim, in_dim_w = weight.shape
    assert in_dim == in_dim_w and bias.shape == (out_dim,)

    # dtype-aware sublane multiple: 8 for f32, 16 for bf16, 32 for int8/fp8.
    itemsize = jnp.dtype(x.dtype).itemsize
    sublane = max(8, 32 // itemsize)
    # 256-multiple N tiles for the 256x256 MXU (v6e/v7x) when out_dim allows;
    # 128 for narrow outputs to limit padding (fine on v5e's 128x128 MXU).
    lane_mult_n = 256 if out_dim > 128 else 128

    tm = min(tm, _round_up(B, sublane))
    tn = min(tn, _round_up(out_dim, lane_mult_n))
    tk = min(tk, _round_up(in_dim, 128))

    Mp = _round_up(B, tm)
    Np = _round_up(out_dim, tn)
    Kp = _round_up(in_dim, tk)

    # v7x megacore: make sure at least one parallel axis (M or N) has >= 2
    # blocks, otherwise one TensorCore sits idle.  Only split when the tile
    # stays natively aligned.
    if (Mp // tm == 1) and (Np // tn == 1):
        if tn >= 2 * lane_mult_n:
            tn //= 2
            Np = _round_up(out_dim, tn)
        elif tm >= 2 * sublane:
            tm = _round_up(tm // 2, sublane)
            Mp = _round_up(B, tm)

    # Zero-pad only when needed (tanh(0)=0 and zero K columns contribute 0,
    # so padding is exact); result is sliced back below if padded.
    x_p = x if (Mp == B and Kp == in_dim) else jnp.pad(
        x, ((0, Mp - B), (0, Kp - in_dim)))
    w_p = weight if (Np == out_dim and Kp == in_dim) else jnp.pad(
        weight, ((0, Np - out_dim), (0, Kp - in_dim)))
    b_p = (bias if Np == out_dim else jnp.pad(bias, (0, Np - out_dim))).reshape(1, Np)

    grid = (Mp // tm, Np // tn, Kp // tk)  # reduction axis last

    kernel = functools.partial(
        fc_kernel, use_activation=use_activation, mxu_dtype=mxu_dtype
    )

    out_p = pl.pallas_call(
        kernel,
        out_shape=jax.ShapeDtypeStruct((Mp, Np), x.dtype),
        grid_spec=pltpu.PrefetchScalarGridSpec(
            num_scalar_prefetch=0,
            grid=grid,
            in_specs=[
                pl.BlockSpec((tm, tk), lambda i, j, k: (i, k)),   # x
                pl.BlockSpec((tn, tk), lambda i, j, k: (j, k)),   # weight (native)
                pl.BlockSpec((1, tn), lambda i, j, k: (0, j)),    # bias
            ],
            out_specs=pl.BlockSpec((tm, tn), lambda i, j, k: (i, j)),
            scratch_shapes=[pltpu.VMEM((tm, tn), jnp.float32)],
        ),
        compiler_params=pltpu.CompilerParams(
            dimension_semantics=("parallel", "parallel", "arbitrary"),
            vmem_limit_bytes=_vmem_limit_bytes(),
        ),
    )(x_p, w_p, b_p)

    if Mp == B and Np == out_dim:
        return out_p
    return out_p[:B, :out_dim]


if __name__ == "__main__":
    key = jax.random.PRNGKey(0)
    k_x, k_w, k_b = jax.random.split(key, 3)

    batch, input_dim, output_dim = 8, 32, 16

    x = jax.random.normal(k_x, (batch, input_dim), dtype=jnp.float32)
    # Deterministic init mirroring nn.Linear's uniform(-1/sqrt(in), 1/sqrt(in)).
    bound = 1.0 / jnp.sqrt(jnp.float32(input_dim))
    weight = jax.random.uniform(
        k_w, (output_dim, input_dim), minval=-bound, maxval=bound, dtype=jnp.float32
    )
    bias = jax.random.uniform(
        k_b, (output_dim,), minval=-bound, maxval=bound, dtype=jnp.float32
    )

    out = fc_layer(x, weight, bias, use_activation=True)
    jax.block_until_ready(out)

    # Sanity check against plain JAX reference (exact-precision f32 path).
    ref = jnp.tanh(x) @ weight.T + bias
    assert out.shape == (batch, output_dim)
    assert jnp.allclose(out, ref, atol=1e-5, rtol=1e-5)

    print("KERNEL_OK")
</pallas_src>

<mosaic_0001>
module attributes {stable_mosaic.version = 11 : i64} {
  func.func @fc_kernel(%arg0: i32, %arg1: i32, %arg2: i32, %arg3: memref<8x128xf32, #tpu.memory_space<vmem>>, %arg4: memref<128x128xf32, #tpu.memory_space<vmem>>, %arg5: memref<1x128xf32, #tpu.memory_space<vmem>>, %arg6: memref<8x128xf32, #tpu.memory_space<vmem>>, %arg7: memref<8x128xf32, #tpu.memory_space<vmem>>) attributes {dimension_semantics = [#tpu.dimension_semantics<parallel>, #tpu.dimension_semantics<parallel>, #tpu.dimension_semantics<arbitrary>], iteration_bounds = array<i64: 1, 1, 1>, scalar_prefetch = 0 : i64, scratch_operands = 1 : i64, tpu.core_type = #tpu.core_type<tc>, window_params = [{transform_indices = @transform_0, window_bounds = array<i64: 8, 128>}, {transform_indices = @transform_1, window_bounds = array<i64: 128, 128>}, {transform_indices = @transform_2, window_bounds = array<i64: 1, 128>}, {transform_indices = @transform_3, window_bounds = array<i64: 8, 128>}]} {
    %c0_i32 = arith.constant 0 : i32
    %0 = arith.cmpi eq, %arg2, %c0_i32 : i32
    %1 = arith.extui %0 : i1 to i32
    %c0_i32_0 = arith.constant 0 : i32
    %2 = arith.cmpi ne, %1, %c0_i32_0 : i32
    scf.if %2 {
      %c0_10 = arith.constant 0 : index
      %c0_11 = arith.constant 0 : index
      %13 = vector.load %arg5[%c0_10, %c0_11] : memref<1x128xf32, #tpu.memory_space<vmem>>, vector<1x128xf32>
      %14 = vector.shape_cast %13 : vector<1x128xf32> to vector<1x128xf32>
      %15 = vector.broadcast %14 : vector<1x128xf32> to vector<8x128xf32>
      %c0_12 = arith.constant 0 : index
      %c0_13 = arith.constant 0 : index
      %16 = vector.load %arg7[%c0_12, %c0_13] : memref<8x128xf32, #tpu.memory_space<vmem>>, vector<8x128xf32>
      tpu.vector_store %arg7[%c0_12, %c0_13], %15 {strides = array<i32>} : memref<8x128xf32, #tpu.memory_space<vmem>>, vector<8x128xf32>,
    } else {
    }
    %c0 = arith.constant 0 : index
    %c0_1 = arith.constant 0 : index
    %3 = vector.load %arg3[%c0, %c0_1] : memref<8x128xf32, #tpu.memory_space<vmem>>, vector<8x128xf32>
    %4 = math.tanh %3 : vector<8x128xf32>
    %c0_2 = arith.constant 0 : index
    %c0_3 = arith.constant 0 : index
    %5 = vector.load %arg4[%c0_2, %c0_3] : memref<128x128xf32, #tpu.memory_space<vmem>>, vector<128x128xf32>
    %c0_4 = arith.constant 0 : index
    %c0_5 = arith.constant 0 : index
    %6 = vector.load %arg7[%c0_4, %c0_5] : memref<8x128xf32, #tpu.memory_space<vmem>>, vector<8x128xf32>
    %cst = arith.constant dense<0.000000e+00> : vector<8x128xf32>
    %7 = tpu.matmul %4, %5, %cst {dimension_numbers = #tpu.dot_dimension_numbers<[1], [1], [0], [0], [0, 0, 1, 0], [], []>} : vector<8x128xf32>, vector<128x128xf32>, vector<8x128xf32> -> vector<8x128xf32>
    %8 = arith.addf %6, %7 : vector<8x128xf32>
    %c0_6 = arith.constant 0 : index
    %c0_7 = arith.constant 0 : index
    %9 = vector.load %arg7[%c0_6, %c0_7] : memref<8x128xf32, #tpu.memory_space<vmem>>, vector<8x128xf32>
    tpu.vector_store %arg7[%c0_6, %c0_7], %8 {strides = array<i32>} : memref<8x128xf32, #tpu.memory_space<vmem>>, vector<8x128xf32>,
    %c0_i32_8 = arith.constant 0 : i32
    %10 = arith.cmpi eq, %arg2, %c0_i32_8 : i32
    %11 = arith.extui %10 : i1 to i32
    %c0_i32_9 = arith.constant 0 : i32
    %12 = arith.cmpi ne, %11, %c0_i32_9 : i32
    scf.if %12 {
      %c0_10 = arith.constant 0 : index
      %c0_11 = arith.constant 0 : index
      %13 = vector.load %arg7[%c0_10, %c0_11] : memref<8x128xf32, #tpu.memory_space<vmem>>, vector<8x128xf32>
      %c0_12 = arith.constant 0 : index
      %c0_13 = arith.constant 0 : index
      %14 = vector.load %arg6[%c0_12, %c0_13] : memref<8x128xf32, #tpu.memory_space<vmem>>, vector<8x128xf32>
      tpu.vector_store %arg6[%c0_12, %c0_13], %13 {strides = array<i32>} : memref<8x128xf32, #tpu.memory_space<vmem>>, vector<8x128xf32>,
    } else {
    }
    return
  }
  func.func @transform_0(%arg0: i32, %arg1: i32, %arg2: i32) -> (i32, i32) {
    %c0_i32 = arith.constant 0 : i32
    return %arg0, %arg2 : i32, i32
  }
  func.func @transform_1(%arg0: i32, %arg1: i32, %arg2: i32) -> (i32, i32) {
    %c0_i32 = arith.constant 0 : i32
    return %arg1, %arg2 : i32, i32
  }
  func.func @transform_2(%arg0: i32, %arg1: i32, %arg2: i32) -> (i32, i32) {
    %c0_i32 = arith.constant 0 : i32
    %c0_i32_0 = arith.constant 0 : i32
    return %c0_i32, %arg1 : i32, i32
  }
  func.func @transform_3(%arg0: i32, %arg1: i32, %arg2: i32) -> (i32, i32) {
    %c0_i32 = arith.constant 0 : i32
    return %arg0, %arg1 : i32, i32
  }
}

</mosaic_0001>

<bundles_post_ra>
// kernel: tpu_custom_call.1
= control target key start
LH: loop header
LB: loop body
LE: loop exit
PB: predicated region body
PF: predicated region fallthrough
CT: control target
= control target key end

     0   :  { %8 = vsyncpa [#allocation4], 0  ;;  %s332_s0 = inlined_call_operand.hbm [shape: f32[8,128], index: 0, kind: input, shape index: {}]   ;;  %s333_s1 = inlined_call_operand.hbm [shape: f32[128,128], index: 1, kind: input, shape index: {}]   ;;  %s334_s2 = inlined_call_operand.vmem [shape: f32[1,128], index: 2, kind: input, shape index: {}]   ;;  %s335_s3 = inlined_call_operand.hbm [shape: f32[8,128], index: 3, kind: output, shape index: {}]  }
   0x1   :  { %9 = vsyncpa [#allocation7], 0 }
   0x2   :  { %10 = vsyncpa [#allocation5], 0  ;;  %s293_s12 = smov [#allocation3]   ;;  %s294_s14 = smov [#allocation6]  }
   0x3   :  { %s17_s13 = sshll.u32 %s293_s12, 4  ;;  %s26_s15 = sshll.u32 %s294_s14, 4  ;;  %s18_s13 = int_to_ptr.vmem [resolvable:$true] %s17_s13  ;;  %s27_s15 = int_to_ptr.vmem [resolvable:$true] %s26_s15 }
   0x4   :  { %s235_s16 = scalar_lea.vmem %s18_s13, 128  ;;  %p240_p1 = scmp.lt.s32.totalorder %s18_s13, %s18_s13 }
   0x5   :  { %p236_p0 = scmp.ne.s32.totalorder %s18_s13, %s235_s16  ;;  %p241_p2 = scmp.lt.s32.totalorder %s235_s16, %s235_s16 }
   0x7   :  { %p242_p3 = por %p241_p2, %p240_p1 }
   0x9   :  { %p243_p4 = pnand %p242_p3, %p236_p0 }
   0xb   :  { %246 = shalt.err (!%p243_p4)
}
   0xc   :  { %20 = dma.hbm_to_vmem [thread:$0]  %s332_s0, 128, %s18_s13, [#allocation4]  }
   0xd   :  { %s255_s19 = scalar_lea.vmem %s27_s15, 2048  ;;  %p260_p6 = scmp.lt.s32.totalorder %s27_s15, %s27_s15 }
   0xe   :  { %p256_p5 = scmp.ne.s32.totalorder %s27_s15, %s255_s19  ;;  %p261_p7 = scmp.lt.s32.totalorder %s255_s19, %s255_s19 }
  0x10   :  { %p262_p8 = por %p261_p7, %p260_p6 }
  0x12   :  { %p263_p9 = pnand %p262_p8, %p256_p5 }
  0x14   :  { %266 = shalt.err (!%p263_p9)
}
  0x15   :  { %s295_s20 = smov 128   ;;  %s296_s21 = smov 8  }
  0x16   :  { %32 = dma.hbm_to_vmem [thread:$0]  %s333_s1, 2048, %s27_s15, [#allocation7], %s295_s20, %s295_s20, %s296_s21  }
  0x17   :  { %287 = dma.done.wait [#allocation4], 128  }
  0x18   :  { %288 = vsyncadd [#allocation4], 4294967168 }
  0x19   :  { %289 = dma.done.wait [#allocation7], 2048  }
  0x1a   :  { %290 = vsyncadd [#allocation7], 4294965248  ;;  %v297_v0 = vmov 0.0   ;;  %vm298_vm0 = vmmov 0   ;;  %v70_v1 = vld [vmem:[#allocation6 + $0x78] sm:$0xff]  ;;  %v69_v2 = vld [vmem:[#allocation6 + $0x70] sm:$0xff] }
  0x1b   :  { %183 = vmatprep.subr.mxu0 %v297_v0  ;;  %215 = vmatprep.mubr.msk.f32.mxu0 %vm298_vm0, %v297_v0  ;;  %v68_v3 = vld [vmem:[#allocation6 + $0x68] sm:$0xff]  ;;  %v67_v4 = vld [vmem:[#allocation6 + $0x60] sm:$0xff]  ;;  %v66_v5 = vld [vmem:[#allocation6 + $0x58] sm:$0xff]  ;;  %s299_s24 = smov [#allocation8]  }
  0x1c   :  { %184 = vmatpush3.xpose.msra.mxu0 %v70_v1  ;;  %v65_v6 = vld [vmem:[#allocation6 + $0x50] sm:$0xff]  ;;  %v64_v7 = vld [vmem:[#allocation6 + $0x48] sm:$0xff]  ;;  %v63_v8 = vld [vmem:[#allocation6 + $0x40] sm:$0xff]  ;;  %s155_s25 = sshll.u32 %s299_s24, 4  ;;  %s156_s25 = int_to_ptr.vmem [resolvable:$true] %s155_s25 }
  0x1d   :  { %185 = vmatprep.subr.mxu0 %v297_v0  ;;  %v62_v9 = vld [vmem:[#allocation6 + $0x38] sm:$0xff]  ;;  %v61_v10 = vld [vmem:[#allocation6 + $0x30] sm:$0xff]  ;;  %v60_v11 = vld [vmem:[#allocation6 + $0x28] sm:$0xff]  ;;  %s267_s26 = scalar_lea.vmem %s156_s25, 128  ;;  %p272_p11 = scmp.lt.s32.totalorder %s156_s25, %s156_s25 }
  0x1e   :  { %v59_v12 = vld [vmem:[#allocation6 + $0x20] sm:$0xff]  ;;  %v53_v13 = vld [vmem:[#allocation3] sm:$0xff]  ;;  %v57_v15 = vld [vmem:[#allocation6 + $0x10] sm:$0xff]  ;;  %p268_p10 = scmp.ne.s32.totalorder %s156_s25, %s267_s26  ;;  %p273_p12 = scmp.lt.s32.totalorder %s267_s26, %s267_s26 }
  0x1f   :  { %v58_v14 = vld [vmem:[#allocation6 + $0x18] sm:$0xff]  ;;  %225 = vtanh.f32 %v53_v13  ;;  %v56_v16 = vld [vmem:[#allocation6 + $0x8] sm:$0xff]  ;;  %v55_v17 = vld [vmem:[#allocation6] sm:$0xff] }
  0x20   :  { %186 = vmatpush3.xpose.msra.mxu0 %v69_v2  ;;  %v165_v19 = vld [vmem:[%s334_s2] ss:$0 sm:$0xff]  ;;  %p274_p13 = por %p273_p12, %p272_p11 }
  0x21   :  { %187 = vmatprep.subr.mxu0 %v297_v0 }
  0x22   :  { %p275_p0 = pnand %p274_p13, %p268_p10 }
  0x24   :  { %188 = vmatpush3.xpose.msra.mxu0 %v68_v3 }
  0x25   :  { %189 = vmatprep.subr.mxu0 %v297_v0 }
  0x28   :  { %190 = vmatpush3.xpose.msra.mxu0 %v67_v4 }
  0x29   :  { %191 = vmatprep.subr.mxu0 %v297_v0 }
  0x2c   :  { %192 = vmatpush3.xpose.msra.mxu0 %v66_v5  ;;  %v226_v18 = vpop.eup %225 }
  0x2d   :  { %193 = vmatprep.subr.mxu0 %v297_v0 }
  0x30   :  { %194 = vmatpush3.xpose.msra.mxu0 %v65_v6 }
  0x31   :  { %195 = vmatprep.subr.mxu0 %v297_v0 }
  0x34   :  { %196 = vmatpush3.xpose.msra.mxu0 %v64_v7 }
  0x35   :  { %197 = vmatprep.subr.mxu0 %v297_v0 }
  0x38   :  { %198 = vmatpush3.xpose.msra.mxu0 %v63_v8 }
  0x39   :  { %199 = vmatprep.subr.mxu0 %v297_v0 }
  0x3c   :  { %200 = vmatpush3.xpose.msra.mxu0 %v62_v9 }
  0x3d   :  { %201 = vmatprep.subr.mxu0 %v297_v0 }
  0x40   :  { %202 = vmatpush3.xpose.msra.mxu0 %v61_v10 }
  0x41   :  { %203 = vmatprep.subr.mxu0 %v297_v0 }
  0x44   :  { %204 = vmatpush3.xpose.msra.mxu0 %v60_v11 }
  0x45   :  { %205 = vmatprep.subr.mxu0 %v297_v0 }
  0x48   :  { %206 = vmatpush3.xpose.msra.mxu0 %v59_v12 }
  0x49   :  { %207 = vmatprep.subr.mxu0 %v297_v0 }
  0x4c   :  { %208 = vmatpush3.xpose.msra.mxu0 %v58_v14 }
  0x4d   :  { %209 = vmatprep.subr.mxu0 %v297_v0 }
  0x50   :  { %210 = vmatpush3.xpose.msra.mxu0 %v57_v15 }
  0x51   :  { %211 = vmatprep.subr.mxu0 %v297_v0 }
  0x54   :  { %212 = vmatpush3.xpose.msra.mxu0 %v56_v16 }
  0x55   :  { %213 = vmatprep.subr.mxu0 %v297_v0 }
  0x58   :  { %214 = vmatpush3.xpose.msra.mxu0 %v55_v17 }
  0x5b   :  { %216 = vmatmul.mubr.f32.vlgmr.msra.gmra.mxu0 %v226_v18 }
 0x11b   :  { %v138_v20 = vpop.f32.mrf.mxu0 }
 0x11c   :  { %v142_v21 = vadd.f32 %v165_v19, %v138_v20 }
 0x11d   :  { %v217_v22 = vpop.f32.mrf.mxu0 }
 0x11e   :  { %148 = vst [vmem:[#allocation8] sm:$0xff] %v142_v21 }
 0x11f   :  { %278 = shalt.err (!%p275_p0)
}
 0x120   :  { %158 = dma.vmem_to_hbm [thread:$0]  %s156_s25, 128, %s335_s3, [#allocation5]  }
 0x121   :  { %291 = dma.done.wait [#allocation5], 128  }
 0x122   :  { %292 = vsyncadd [#allocation5], 4294967168 }
 0x123   :  { %162 = vsyncpa [#allocation4], 1 }
 0x124   :  { %163 = vsyncpa [#allocation7], 1 }
 0x125   :  { %164 = vsyncpa [#allocation5], 1 }

</bundles_post_ra>
